<compile_context>
chip_gen: v7x
topology: tpu7x:2x2x1
jax: 0.10.0
libtpu: 0.0.40
codegen_flags: <defaults>
</compile_context>

<pallas_src>
import jax
import jax.numpy as jnp
from jax.experimental import pallas as pl
from jax.experimental.pallas import tpu as pltpu

LANE = 128
SUBLANE = 8


def _round_up(a, b):
    return ((a + b - 1) // b) * b


def coupling_fwd_kernel(x_ref, w1_ref, b1_ref, w2_ref, b2_ref, w3_ref, b3_ref,
                        y_ref, ld_ref):
    x = x_ref[...]                               # (TB, C) f32, unpadded width
    C = x.shape[1]
    Cp = w3_ref.shape[1] // 2                    # lane-aligned half-width of the head

    # --- layer 1 (mask already folded into w1 rows) ---
    if C <= 16:
        # Small C: C broadcast-FMAs on the VPU instead of a mostly-zero MXU pass.
        w1 = w1_ref[...]                         # (C, H) f32
        z = x[:, 0:1] * w1[0:1, :]
        for c in range(1, C):
            z = z + x[:, c:c + 1] * w1[c:c + 1, :]
        z = z + b1_ref[...]
    else:
        z = jnp.dot(x.astype(jnp.bfloat16), w1_ref[...].astype(jnp.bfloat16),
                    preferred_element_type=jnp.float32) + b1_ref[...]
    h = jnp.maximum(z, 0.01 * z)                 # nn.LeakyReLU default slope

    # --- layer 2 (MXU, bf16 operands / f32 accumulation) ---
    z = jnp.dot(h.astype(jnp.bfloat16), w2_ref[...],
                preferred_element_type=jnp.float32) + b2_ref[...]
    h = jnp.maximum(z, 0.01 * z)

    # --- fused s|t head: single (H, 2*Cp) matmul; (1-mask) folded into w3/b3 ---
    out = jnp.dot(h.astype(jnp.bfloat16), w3_ref[...],
                  preferred_element_type=jnp.float32) + b3_ref[...]   # (TB, 2*Cp)
    s = jnp.tanh(out[:, :C])                     # masked cols are exactly 0
    t = out[:, Cp:Cp + C]                        # masked cols are exactly 0

    # On mask==1 lanes s==t==0, so x*exp(s)+t == x -> no select needed.
    y_ref[...] = x * jnp.exp(s) + t
    ld_ref[...] = jnp.sum(s, axis=1, keepdims=True)   # (TB, 1)


def make_params(key, input_channel, channel=256):
    """Deterministic synthetic init; weights stored as (in_features, out_features)."""
    k1, k2, k3, k4, k5, k6 = jax.random.split(key, 6)
    scale = 0.05
    return {
        "w1": scale * jax.random.normal(k1, (input_channel, channel), jnp.float32),
        "b1": scale * jax.random.normal(k2, (1, channel), jnp.float32),
        "w2": scale * jax.random.normal(k3, (channel, channel), jnp.float32),
        "b2": scale * jax.random.normal(k4, (1, channel), jnp.float32),
        "w3": scale * jax.random.normal(k5, (channel, 2 * input_channel), jnp.float32),
        "b3": scale * jax.random.normal(k6, (1, 2 * input_channel), jnp.float32),
    }


def make_mask(mask_type, input_channel):
    d = input_channel // 2
    if "01" in mask_type:
        m = [0.0] * d + [1.0] * (input_channel - d)
    else:
        m = [1.0] * d + [0.0] * (input_channel - d)
    return jnp.asarray([m], dtype=jnp.float32)          # (1, C)


def prepare_kernel_params(raw, mask, input_channel, channel):
    """Fold the {0,1} mask into the weights, fuse the s/t head into one
    (H, 2*Cp) matrix whose halves are lane-aligned, and cast the MXU operands
    to bf16.  Layer-1 weights stay f32 (computed on the VPU for small C)."""
    C, H = input_channel, channel
    Cp = _round_up(C, LANE)
    mrow = mask[0]                       # (C,)
    inv = 1.0 - mrow                     # (C,)

    # x @ (mask[:,None] * w1)  ==  (x * mask) @ w1
    w1 = (raw["w1"] * mrow[:, None]).astype(jnp.float32)          # (C, H)

    w3s = jnp.zeros((H, Cp), jnp.float32).at[:, :C].set(raw["w3"][:, :C] * inv[None, :])
    w3t = jnp.zeros((H, Cp), jnp.float32).at[:, :C].set(raw["w3"][:, C:] * inv[None, :])
    w3 = jnp.concatenate([w3s, w3t], axis=1).astype(jnp.bfloat16)  # (H, 2*Cp)

    b3s = jnp.zeros((1, Cp), jnp.float32).at[:, :C].set(raw["b3"][:, :C] * inv[None, :])
    b3t = jnp.zeros((1, Cp), jnp.float32).at[:, :C].set(raw["b3"][:, C:] * inv[None, :])
    b3 = jnp.concatenate([b3s, b3t], axis=1)                       # (1, 2*Cp) f32

    return {
        "C": C, "Cp": Cp, "H": H,
        "w1": w1, "b1": raw["b1"],
        "w2": raw["w2"].astype(jnp.bfloat16), "b2": raw["b2"],
        "w3": w3, "b3": b3,
    }


def coupling_layer_forward(x, kparams, tb=None):
    """x: (B, C) float32; kparams: output of prepare_kernel_params."""
    B, C = x.shape
    H, Cp = kparams["H"], kparams["Cp"]
    assert C == kparams["C"]

    if tb is None:
        # Large tiles amortize the ~0.35us per-step pipeline overhead; keep the
        # grid at >= 2 steps so both v7x TensorCores get work.
        tb = min(512, _round_up(max(B // 2, SUBLANE), SUBLANE))
    tb = max(SUBLANE, _round_up(tb, SUBLANE))
    Bp = _round_up(B, tb)

    x_in = x.astype(jnp.float32)
    if Bp != B:
        x_in = jnp.pad(x_in, ((0, Bp - B), (0, 0)))     # batch pad only (C stays true width)

    row_spec = lambda w: pl.BlockSpec((tb, w), lambda i: (i, 0))    # batch-tiled
    const_spec = lambda shp: pl.BlockSpec(shp, lambda i: (0, 0))    # resident block

    y_p, ld_p = pl.pallas_call(
        coupling_fwd_kernel,
        out_shape=(
            jax.ShapeDtypeStruct((Bp, C), jnp.float32),
            jax.ShapeDtypeStruct((Bp, 1), jnp.float32),
        ),
        grid=(Bp // tb,),
        in_specs=[
            row_spec(C),                  # x (unpadded feature width)
            const_spec((C, H)),           # w1 (mask-folded, f32)
            const_spec((1, H)),           # b1
            const_spec((H, H)),           # w2 (bf16)
            const_spec((1, H)),           # b2
            const_spec((H, 2 * Cp)),      # w3 fused s|t head (inv-mask folded, bf16)
            const_spec((1, 2 * Cp)),      # b3 fused (f32)
        ],
        out_specs=(row_spec(C), row_spec(1)),
        compiler_params=pltpu.CompilerParams(
            dimension_semantics=("parallel",),
            vmem_limit_bytes=32 * 1024 * 1024),
    )(x_in, kparams["w1"], kparams["b1"], kparams["w2"], kparams["b2"],
      kparams["w3"], kparams["b3"])

    # Drop batch padding; log_det -> (B,) to match torch.sum(s, 1).
    return y_p[:B], ld_p[:B, 0]


if __name__ == "__main__":
    key = jax.random.PRNGKey(0)
    kx, kp = jax.random.split(key)

    B, C, H = 20, 4, 256                 # small shapes matching the module
    x = jax.random.normal(kx, (B, C), jnp.float32)
    mask = make_mask("01", C)
    raw = make_params(kp, C, H)
    kparams = prepare_kernel_params(raw, mask, C, H)

    # tb=8 exercises a multi-tile grid (3 tiles) and batch padding (20 -> 24);
    # the second call uses the default (larger-tile) selection path.
    y, log_det = coupling_layer_forward(x, kparams, tb=8)
    y2, log_det2 = coupling_layer_forward(x, kparams)
    jax.block_until_ready((y, log_det, y2, log_det2))

    # Reference: original (unfolded, unpadded, f32) CouplingLayer semantics.
    def ref(x, mask, p):
        x1 = x * mask
        z = x1 @ p["w1"] + p["b1"]
        h = jnp.where(z > 0, z, 0.01 * z)
        z = h @ p["w2"] + p["b2"]
        h = jnp.where(z > 0, z, 0.01 * z)
        out = h @ p["w3"] + p["b3"]
        inv = 1.0 - mask
        s = jnp.tanh(out[:, :C] * inv)
        t = out[:, C:] * inv
        return x1 + inv * (x * jnp.exp(s) + t), jnp.sum(s, axis=1)

    y_ref, ld_ref = ref(x, mask, raw)
    assert y.shape == (B, C) and log_det.shape == (B,)
    for yy, ll in ((y, log_det), (y2, log_det2)):
        # bf16 matmul operands (layers 2/3) vs f32 reference -> loose tolerance.
        assert jnp.allclose(yy, y_ref, atol=1e-2, rtol=1e-2), "y mismatch"
        assert jnp.allclose(ll, ld_ref, atol=1e-2, rtol=1e-2), "log_det mismatch"

    print("KERNEL_OK")
</pallas_src>

<mosaic_0001>
module attributes {stable_mosaic.version = 11 : i64} {
  func.func @coupling_fwd_kernel(%arg0: i32, %arg1: memref<8x4xf32, #tpu.memory_space<vmem>>, %arg2: memref<4x256xf32, #tpu.memory_space<vmem>>, %arg3: memref<1x256xf32, #tpu.memory_space<vmem>>, %arg4: memref<256x256xbf16, #tpu.memory_space<vmem>>, %arg5: memref<1x256xf32, #tpu.memory_space<vmem>>, %arg6: memref<256x256xbf16, #tpu.memory_space<vmem>>, %arg7: memref<1x256xf32, #tpu.memory_space<vmem>>, %arg8: memref<8x4xf32, #tpu.memory_space<vmem>>, %arg9: memref<8x1xf32, #tpu.memory_space<vmem>>) attributes {dimension_semantics = [#tpu.dimension_semantics<parallel>], iteration_bounds = array<i64: 3>, scalar_prefetch = 0 : i64, scratch_operands = 0 : i64, tpu.core_type = #tpu.core_type<tc>, window_params = [{transform_indices = @transform_0, window_bounds = array<i64: 8, 4>}, {pipeline_mode = #tpu.pipeline_mode<synchronous>, transform_indices = @transform_1, window_bounds = array<i64: 4, 256>}, {pipeline_mode = #tpu.pipeline_mode<synchronous>, transform_indices = @transform_2, window_bounds = array<i64: 1, 256>}, {pipeline_mode = #tpu.pipeline_mode<synchronous>, transform_indices = @transform_3, window_bounds = array<i64: 256, 256>}, {pipeline_mode = #tpu.pipeline_mode<synchronous>, transform_indices = @transform_4, window_bounds = array<i64: 1, 256>}, {pipeline_mode = #tpu.pipeline_mode<synchronous>, transform_indices = @transform_5, window_bounds = array<i64: 256, 256>}, {pipeline_mode = #tpu.pipeline_mode<synchronous>, transform_indices = @transform_6, window_bounds = array<i64: 1, 256>}, {transform_indices = @transform_7, window_bounds = array<i64: 8, 4>}, {transform_indices = @transform_8, window_bounds = array<i64: 8, 1>}]} {
    %c0 = arith.constant 0 : index
    %c0_0 = arith.constant 0 : index
    %0 = vector.load %arg1[%c0, %c0_0] : memref<8x4xf32, #tpu.memory_space<vmem>>, vector<8x4xf32>
    %c0_1 = arith.constant 0 : index
    %c0_2 = arith.constant 0 : index
    %1 = vector.load %arg2[%c0_1, %c0_2] : memref<4x256xf32, #tpu.memory_space<vmem>>, vector<4x256xf32>
    %2 = vector.extract_strided_slice %0 {offsets = [0, 0], sizes = [8, 1], strides = [1, 1]} : vector<8x4xf32> to vector<8x1xf32>
    %3 = vector.extract_strided_slice %1 {offsets = [0, 0], sizes = [1, 256], strides = [1, 1]} : vector<4x256xf32> to vector<1x256xf32>
    %4 = vector.broadcast %2 : vector<8x1xf32> to vector<8x256xf32>
    %5 = vector.broadcast %3 : vector<1x256xf32> to vector<8x256xf32>
    %6 = arith.mulf %4, %5 : vector<8x256xf32>
    %7 = vector.extract_strided_slice %0 {offsets = [0, 1], sizes = [8, 1], strides = [1, 1]} : vector<8x4xf32> to vector<8x1xf32>
    %8 = vector.extract_strided_slice %1 {offsets = [1, 0], sizes = [1, 256], strides = [1, 1]} : vector<4x256xf32> to vector<1x256xf32>
    %9 = vector.broadcast %7 : vector<8x1xf32> to vector<8x256xf32>
    %10 = vector.broadcast %8 : vector<1x256xf32> to vector<8x256xf32>
    %11 = arith.mulf %9, %10 : vector<8x256xf32>
    %12 = arith.addf %6, %11 : vector<8x256xf32>
    %13 = vector.extract_strided_slice %0 {offsets = [0, 2], sizes = [8, 1], strides = [1, 1]} : vector<8x4xf32> to vector<8x1xf32>
    %14 = vector.extract_strided_slice %1 {offsets = [2, 0], sizes = [1, 256], strides = [1, 1]} : vector<4x256xf32> to vector<1x256xf32>
    %15 = vector.broadcast %13 : vector<8x1xf32> to vector<8x256xf32>
    %16 = vector.broadcast %14 : vector<1x256xf32> to vector<8x256xf32>
    %17 = arith.mulf %15, %16 : vector<8x256xf32>
    %18 = arith.addf %12, %17 : vector<8x256xf32>
    %19 = vector.extract_strided_slice %0 {offsets = [0, 3], sizes = [8, 1], strides = [1, 1]} : vector<8x4xf32> to vector<8x1xf32>
    %20 = vector.extract_strided_slice %1 {offsets = [3, 0], sizes = [1, 256], strides = [1, 1]} : vector<4x256xf32> to vector<1x256xf32>
    %21 = vector.broadcast %19 : vector<8x1xf32> to vector<8x256xf32>
    %22 = vector.broadcast %20 : vector<1x256xf32> to vector<8x256xf32>
    %23 = arith.mulf %21, %22 : vector<8x256xf32>
    %24 = arith.addf %18, %23 : vector<8x256xf32>
    %c0_3 = arith.constant 0 : index
    %c0_4 = arith.constant 0 : index
    %25 = vector.load %arg3[%c0_3, %c0_4] : memref<1x256xf32, #tpu.memory_space<vmem>>, vector<1x256xf32>
    %26 = vector.broadcast %25 : vector<1x256xf32> to vector<8x256xf32>
    %27 = arith.addf %24, %26 : vector<8x256xf32>
    %cst = arith.constant 0.00999999977 : f32
    %28 = vector.broadcast %cst : f32 to vector<8x256xf32>
    %29 = arith.mulf %28, %27 : vector<8x256xf32>
    %30 = arith.maximumf %27, %29 : vector<8x256xf32>
    %31 = arith.truncf %30 : vector<8x256xf32> to vector<8x256xbf16>
    %c0_5 = arith.constant 0 : index
    %c0_6 = arith.constant 0 : index
    %32 = vector.load %arg4[%c0_5, %c0_6] : memref<256x256xbf16, #tpu.memory_space<vmem>>, vector<256x256xbf16>
    %cst_7 = arith.constant dense<0.000000e+00> : vector<8x256xf32>
    %33 = tpu.matmul %31, %32, %cst_7 {dimension_numbers = #tpu.dot_dimension_numbers<[1], [0], [0], [1], [0, 0, 1, 1], [], []>} : vector<8x256xbf16>, vector<256x256xbf16>, vector<8x256xf32> -> vector<8x256xf32>
    %c0_8 = arith.constant 0 : index
    %c0_9 = arith.constant 0 : index
    %34 = vector.load %arg5[%c0_8, %c0_9] : memref<1x256xf32, #tpu.memory_space<vmem>>, vector<1x256xf32>
    %35 = vector.broadcast %34 : vector<1x256xf32> to vector<8x256xf32>
    %36 = arith.addf %33, %35 : vector<8x256xf32>
    %cst_10 = arith.constant 0.00999999977 : f32
    %37 = vector.broadcast %cst_10 : f32 to vector<8x256xf32>
    %38 = arith.mulf %37, %36 : vector<8x256xf32>
    %39 = arith.maximumf %36, %38 : vector<8x256xf32>
    %40 = arith.truncf %39 : vector<8x256xf32> to vector<8x256xbf16>
    %c0_11 = arith.constant 0 : index
    %c0_12 = arith.constant 0 : index
    %41 = vector.load %arg6[%c0_11, %c0_12] : memref<256x256xbf16, #tpu.memory_space<vmem>>, vector<256x256xbf16>
    %cst_13 = arith.constant dense<0.000000e+00> : vector<8x256xf32>
    %42 = tpu.matmul %40, %41, %cst_13 {dimension_numbers = #tpu.dot_dimension_numbers<[1], [0], [0], [1], [0, 0, 1, 1], [], []>} : vector<8x256xbf16>, vector<256x256xbf16>, vector<8x256xf32> -> vector<8x256xf32>
    %c0_14 = arith.constant 0 : index
    %c0_15 = arith.constant 0 : index
    %43 = vector.load %arg7[%c0_14, %c0_15] : memref<1x256xf32, #tpu.memory_space<vmem>>, vector<1x256xf32>
    %44 = vector.broadcast %43 : vector<1x256xf32> to vector<8x256xf32>
    %45 = arith.addf %42, %44 : vector<8x256xf32>
    %46 = vector.extract_strided_slice %45 {offsets = [0, 0], sizes = [8, 4], strides = [1, 1]} : vector<8x256xf32> to vector<8x4xf32>
    %47 = math.tanh %46 : vector<8x4xf32>
    %48 = vector.extract_strided_slice %45 {offsets = [0, 128], sizes = [8, 4], strides = [1, 1]} : vector<8x256xf32> to vector<8x4xf32>
    %49 = math.exp %47 : vector<8x4xf32>
    %50 = arith.mulf %0, %49 : vector<8x4xf32>
    %51 = arith.addf %50, %48 : vector<8x4xf32>
    %c0_16 = arith.constant 0 : index
    %c0_17 = arith.constant 0 : index
    %52 = vector.load %arg8[%c0_16, %c0_17] : memref<8x4xf32, #tpu.memory_space<vmem>>, vector<8x4xf32>
    tpu.vector_store %arg8[%c0_16, %c0_17], %51 {strides = array<i32>} : memref<8x4xf32, #tpu.memory_space<vmem>>, vector<8x4xf32>,
    %cst_18 = arith.constant dense<0.000000e+00> : vector<8xf32>
    %53 = vector.multi_reduction <add>, %47, %cst_18 [1] : vector<8x4xf32> to vector<8xf32>
    %54 = vector.shape_cast %53 : vector<8xf32> to vector<8x1xf32>
    %c0_19 = arith.constant 0 : index
    %c0_20 = arith.constant 0 : index
    %55 = vector.load %arg9[%c0_19, %c0_20] : memref<8x1xf32, #tpu.memory_space<vmem>>, vector<8x1xf32>
    tpu.vector_store %arg9[%c0_19, %c0_20], %54 {strides = array<i32>} : memref<8x1xf32, #tpu.memory_space<vmem>>, vector<8x1xf32>,
    return
  }
  func.func @transform_0(%arg0: i32) -> (i32, i32) {
    %c0_i32 = arith.constant 0 : i32
    %c0_i32_0 = arith.constant 0 : i32
    return %arg0, %c0_i32 : i32, i32
  }
  func.func @transform_1(%arg0: i32) -> (i32, i32) {
    %c0_i32 = arith.constant 0 : i32
    %c0_i32_0 = arith.constant 0 : i32
    %c0_i32_1 = arith.constant 0 : i32
    return %c0_i32, %c0_i32_0 : i32, i32
  }
  func.func @transform_2(%arg0: i32) -> (i32, i32) {
    %c0_i32 = arith.constant 0 : i32
    %c0_i32_0 = arith.constant 0 : i32
    %c0_i32_1 = arith.constant 0 : i32
    return %c0_i32, %c0_i32_0 : i32, i32
  }
  func.func @transform_3(%arg0: i32) -> (i32, i32) {
    %c0_i32 = arith.constant 0 : i32
    %c0_i32_0 = arith.constant 0 : i32
    %c0_i32_1 = arith.constant 0 : i32
    return %c0_i32, %c0_i32_0 : i32, i32
  }
  func.func @transform_4(%arg0: i32) -> (i32, i32) {
    %c0_i32 = arith.constant 0 : i32
    %c0_i32_0 = arith.constant 0 : i32
    %c0_i32_1 = arith.constant 0 : i32
    return %c0_i32, %c0_i32_0 : i32, i32
  }
  func.func @transform_5(%arg0: i32) -> (i32, i32) {
    %c0_i32 = arith.constant 0 : i32
    %c0_i32_0 = arith.constant 0 : i32
    %c0_i32_1 = arith.constant 0 : i32
    return %c0_i32, %c0_i32_0 : i32, i32
  }
  func.func @transform_6(%arg0: i32) -> (i32, i32) {
    %c0_i32 = arith.constant 0 : i32
    %c0_i32_0 = arith.constant 0 : i32
    %c0_i32_1 = arith.constant 0 : i32
    return %c0_i32, %c0_i32_0 : i32, i32
  }
  func.func @transform_7(%arg0: i32) -> (i32, i32) {
    %c0_i32 = arith.constant 0 : i32
    %c0_i32_0 = arith.constant 0 : i32
    return %arg0, %c0_i32 : i32, i32
  }
  func.func @transform_8(%arg0: i32) -> (i32, i32) {
    %c0_i32 = arith.constant 0 : i32
    %c0_i32_0 = arith.constant 0 : i32
    return %arg0, %c0_i32 : i32, i32
  }
}

</mosaic_0001>

<bundles_post_ra>
// kernel: tpu_custom_call.1
= control target key start
LH: loop header
LB: loop body
LE: loop exit
PB: predicated region body
PF: predicated region fallthrough
CT: control target
= control target key end

     0   :  { %14 = vsyncpa [#allocation3], 0  ;;  %s1561_s0 = inlined_call_operand.vmem [shape: f32[24,4], index: 0, kind: input, shape index: {}]   ;;  %s1562_s1 = inlined_call_operand.vmem [shape: f32[4,256], index: 1, kind: input, shape index: {}]   ;;  %s1563_s2 = inlined_call_operand.vmem [shape: f32[1,256], index: 2, kind: input, shape index: {}]   ;;  %s1564_s3 = inlined_call_operand.hbm [shape: bf16[256,256], index: 3, kind: input, shape index: {}]   ;;  %s1565_s4 = inlined_call_operand.vmem [shape: f32[1,256], index: 4, kind: input, shape index: {}]   ;;  %s1566_s5 = inlined_call_operand.hbm [shape: bf16[256,256], index: 5, kind: input, shape index: {}]   ;;  %s1567_s6 = inlined_call_operand.vmem [shape: f32[1,256], index: 6, kind: input, shape index: {}]   ;;  %s1568_s7 = inlined_call_operand.vmem [shape: f32[24,4], index: 7, kind: output, shape index: {0}]   ;;  %s1569_s8 = inlined_call_operand.vmem [shape: f32[24,1], index: 8, kind: output, shape index: {1}]  }
   0x1   :  { %15 = vsyncpa [#allocation5], 0  ;;  %s1425_s27 = smov 0  }
   0x2 LB: > { %s1431_s28 = sadd.s32 4294967295, %s1370_s27   ;;  %p1084_p0 = scmp.ge.s32.totalorder %s1370_s27, 1  ;;  %s1370_s27 = sphi %s1425_s27, %s21_s27  }
   0x3   : > { %p230_p1 = scmp.lt.s32.totalorder %s1370_s27, 4  ;;  %s1372_s29 = smov [#allocation2]  }
   0x4   : > { %s248_s30 = sshll.u32 %s1372_s29, 4  ;;  %p1570_p3 = scmp.eq.s32.totalorder %s1431_s28, 0  ;;  %s249_s30 = int_to_ptr.vmem [resolvable:$true] %s248_s30 }
   0x5   : > { %p1435_p2 = pnand %p1084_p0, %p230_p1  ;;  %s1373_s10 = smov [#allocation4]  }
   0x6   : > { %s264_s11 = sshll.u32 %s1373_s10, 4  ;;  %s1300_s15 = scalar_lea.hbm %s1564_s3, 4096  ;;  %s1448_s11 = int_to_ptr.vmem [resolvable:$true] %s264_s11 }
   0x7   : > { %s1572_s9 = scalar_select %p1435_p2, 1, 0 }
   0x8   : > { %p1168_p4 = pneg %p1435_p2  ;;  %p1301_p6 = scmp.ne.s32.totalorder %s1564_s3, %s1300_s15 }
   0x9   : > { %p1307_p10 = scmp.lt.u32.totalorder %s1300_s15, %s1564_s3 }
   0xa   : > { %p1444_p5 = pnand %p1570_p3, %p1168_p4 }
   0xc   : > { %p1302_p7 = pneg %p1444_p5 }
   0xe   : > { %p1303_p8 = pnand %p1302_p7, %p1301_p6 }
  0x10   : > { %p1304_p9 = pneg %p1303_p8 }
  0x12   : > { %p1309_p11 = pnand %p1307_p10, %p1304_p9 }
  0x14   : > { %1312 = shalt.err (!%p1309_p11)
}
  0x15   : > { %s1313_s20 = scalar_lea.vmem %s249_s30, 4096  ;;  %p1321_p1 = scmp.lt.s32.totalorder %s249_s30, %s249_s30 }
  0x16   : > { %p1314_p12 = scmp.ne.s32.totalorder %s249_s30, %s1313_s20  ;;  %p1322_p4 = scmp.lt.s32.totalorder %s1313_s20, %s1313_s20 }
  0x18   : > { %p1316_p13 = pnand %p1314_p12, %p1302_p7  ;;  %p1323_p3 = por %p1322_p4, %p1321_p1 }
  0x1a   : > { %p1317_p0 = pneg %p1316_p13 }
  0x1c   : > { %p1324_p2 = pnand %p1323_p3, %p1317_p0 }
  0x1e   : > { %1327 = shalt.err (!%p1324_p2)
}
  0x1f   : > { %s1374_s21 = smov 128   ;;  %s1375_s22 = smov 8  }
  0x20   : > { %1171 = dma.hbm_to_vmem [thread:$0]  (!%p1444_p5), %s1564_s3, 4096, %s249_s30, [#allocation3], %s1374_s21, %s1374_s21, %s1375_s22  }
  0x21   : > { %s1328_s29 = scalar_lea.hbm %s1566_s5, 4096 }
  0x22   : > { %p1329_p6 = scmp.ne.s32.totalorder %s1566_s5, %s1328_s29  ;;  %p1335_p8 = scmp.lt.u32.totalorder %s1328_s29, %s1566_s5 }
  0x24   : > { %p1331_p2 = pnand %p1329_p6, %p1302_p7 }
  0x26   : > { %p1332_p3 = pneg %p1331_p2 }
  0x28   : > { %p1337_p9 = pnand %p1335_p8, %p1332_p3 }
  0x2a   : > { %1340 = shalt.err (!%p1337_p9)
}
  0x2b   : > { %s1341_s30 = scalar_lea.vmem %s1448_s11, 4096  ;;  %p1349_p13 = scmp.lt.s32.totalorder %s1448_s11, %s1448_s11 }
  0x2c   : > { %p1342_p10 = scmp.ne.s32.totalorder %s1448_s11, %s1341_s30  ;;  %p1350_p0 = scmp.lt.s32.totalorder %s1341_s30, %s1341_s30 }
  0x2e   : > { %p1344_p11 = pnand %p1342_p10, %p1302_p7  ;;  %p1351_p1 = por %p1350_p0, %p1349_p13 }
  0x30   : > { %p1345_p12 = pneg %p1344_p11 }
  0x32   : > { %p1352_p4 = pnand %p1351_p1, %p1345_p12 }
  0x34   : > { %1355 = shalt.err (!%p1352_p4)
}
  0x35   : > { %1174 = dma.hbm_to_vmem [thread:$0]  (!%p1444_p5), %s1566_s5, 4096, %s1448_s11, [#allocation5], %s1374_s21, %s1374_s21, %s1375_s22  }
  0x36   : > { %p1574_p6 = scmp.ne.s32.totalorder %s1572_s9, 0 }
  0x37   : > { %p1575_p2 = scmp.eq.s32.totalorder (!%p1574_p6), %s1431_s28, 0 }
  0x38   : > { %290 = sbr.rel (%p1574_p6) target bundleno = 814 (0x32e), region = 48 }
  0x3f   : > { %1361 = dma.done.wait (%p1575_p2), [#allocation3], 4096   ;;  %p1576_p7 = pmov %p1575_p2 }
  0x40   : > { %p1577_p3 = pmov %p1575_p2 }
  0x41   : > { %1363 = vsyncadd (%p1576_p7), [#allocation3], 4294963200 }
  0x42   : > { %1365 = dma.done.wait (%p1577_p3), [#allocation5], 4096   ;;  %p1578_p8 = pmov %p1575_p2 }
  0x43   : > { %p330_p9 = scmp.lt.s32.totalorder %s1431_s28, 2  ;;  %v1376_v0 = vmov 0   ;;  %v1377_v1 = vmov 2   ;;  %v1200_v3 = vld [vmem:[#allocation2 + $0x4] ss:$8 sps:$4 sm:$0xff]   ;;  %v1378_v7 = vmov 1  }
  0x44   : > { %1367 = vsyncadd (%p1578_p8), [#allocation5], 4294963200  ;;  %1195 = vset.pattern.permute.xlu0 %v1376_v0  ;;  %1197 = vset.pattern.permute.xlu1 %v1377_v1  ;;  %v1202_v4 = vld [vmem:[#allocation2] ss:$8 sps:$4 sm:$0xff]   ;;  %v1203_v5 = vld [vmem:[#allocation2 + $0x14] ss:$8 sps:$4 sm:$0xff]   ;;  %v350_v0 = vlaneseq }
  0x45   : > { %s1580_s28 = smov (!%p330_p9, %s1431_s28), 2  ;;  %672 = vmatprep.subr.bf16.mxu0 %v1200_v3  ;;  %v1205_v6 = vld [vmem:[#allocation2 + $0x10] ss:$8 sps:$4 sm:$0xff]   ;;  %v1379_v8 = vmov 3   ;;  %v1206_v9 = vld [vmem:[#allocation2 + $0x24] ss:$8 sps:$4 sm:$0xff]  }
  0x46   : > { %s1509_s9 = sshll.u32 %s1580_s28, 3  ;;  %673 = vmatpush1.bf16.msra.mxu0 %v1202_v4  ;;  %v1208_v10 = vld [vmem:[#allocation2 + $0x20] ss:$8 sps:$4 sm:$0xff]   ;;  %v1209_v11 = vld [vmem:[#allocation2 + $0x34] ss:$8 sps:$4 sm:$0xff]   ;;  %v351_v1 = vshrl.u32 %v350_v0, 7 }
  0x47   : > { %s333_s18 = scalar_lea.vmem %s1561_s0, %s1509_s9  ;;  %674 = vmatprep.subr.bf16.mxu0 %v1203_v5  ;;  %v1211_v12 = vld [vmem:[#allocation2 + $0x30] ss:$8 sps:$4 sm:$0xff]   ;;  %v1212_v13 = vld [vmem:[#allocation2 + $0x44] ss:$8 sps:$4 sm:$0xff]   ;;  %v1214_v14 = vld [vmem:[#allocation2 + $0x40] ss:$8 sps:$4 sm:$0xff]   ;;  %s337_s10 = scalar_lea.vmem %s1568_s7, %s1509_s9 }
  0x48   : > { %v1515_v2 = vld [vmem:[%s333_s18] sm:$0xff]  ;;  %v1215_v15 = vld [vmem:[#allocation2 + $0x54] ss:$8 sps:$4 sm:$0xff]   ;;  %v1217_v16 = vld [vmem:[#allocation2 + $0x50] ss:$8 sps:$4 sm:$0xff]   ;;  %v1521_v3 = vsub.s32 0, %v351_v1  ;;  %s341_s15 = scalar_lea.vmem %s1569_s8, %s1509_s9 }
  0x49   : > { %346 = vperm.xlu0 %1195, %v1515_v2   ;;  %397 = vperm.xlu1 %1197, %v1515_v2   ;;  %v1218_v17 = vld [vmem:[#allocation2 + $0x64] ss:$8 sps:$4 sm:$0xff]   ;;  %v1250_v19 = vld [vmem:[#allocation4] ss:$8 sps:$4 sm:$0xff]   ;;  %v1251_v21 = vld [vmem:[#allocation4 + $0x14] ss:$8 sps:$4 sm:$0xff]  }
  0x4a   : > { %675 = vmatpush1.bf16.msra.mxu0 %v1205_v6  ;;  %v1248_v18 = vld [vmem:[#allocation4 + $0x4] ss:$8 sps:$4 sm:$0xff]   ;;  %v1220_v20 = vld [vmem:[#allocation2 + $0x60] ss:$8 sps:$4 sm:$0xff]   ;;  %v1221_v22 = vld [vmem:[#allocation2 + $0x74] ss:$8 sps:$4 sm:$0xff]  }
  0x4b   : > { %676 = vmatprep.subr.bf16.mxu0 %v1206_v9  ;;  %923 = vmatprep.subr.bf16.mxu1 %v1248_v18  ;;  %v1253_v23 = vld [vmem:[#allocation4 + $0x10] ss:$8 sps:$4 sm:$0xff]   ;;  %v1254_v24 = vld [vmem:[#allocation4 + $0x24] ss:$8 sps:$4 sm:$0xff]   ;;  %v1256_v27 = vld [vmem:[#allocation4 + $0x20] ss:$8 sps:$4 sm:$0xff]  }
  0x4c   : > { %924 = vmatpush1.bf16.msra.mxu1 %v1250_v19  ;;  %v1223_v25 = vld [vmem:[#allocation2 + $0x70] ss:$8 sps:$4 sm:$0xff]   ;;  %v1224_v26 = vld [vmem:[#allocation2 + $0x84] ss:$8 sps:$4 sm:$0xff]   ;;  %v1257_v28 = vld [vmem:[#allocation4 + $0x34] ss:$8 sps:$4 sm:$0xff]  }
  0x4d   : > { %1196 = vset.pattern.permute.xlu0 %v1378_v7  ;;  %1198 = vset.pattern.permute.xlu1 %v1379_v8  ;;  %v1226_v29 = vld [vmem:[#allocation2 + $0x80] ss:$8 sps:$4 sm:$0xff]   ;;  %v1227_v30 = vld [vmem:[#allocation2 + $0x94] ss:$8 sps:$4 sm:$0xff]   ;;  %v1259_v31 = vld [vmem:[#allocation4 + $0x30] ss:$8 sps:$4 sm:$0xff]  }
  0x4e   : > { %371 = vperm.xlu0 %1196, %v1515_v2   ;;  %423 = vperm.xlu1 %1198, %v1515_v2   ;;  %v1260_v32 = vld [vmem:[#allocation4 + $0x44] ss:$8 sps:$4 sm:$0xff]   ;;  %v1229_v33 = vld [vmem:[#allocation2 + $0x90] ss:$8 sps:$4 sm:$0xff]   ;;  %v1262_v35 = vld [vmem:[#allocation4 + $0x40] ss:$8 sps:$4 sm:$0xff]  }
  0x4f   : > { %677 = vmatpush1.bf16.msra.mxu0 %v1208_v10  ;;  %925 = vmatprep.subr.bf16.mxu1 %v1251_v21  ;;  %v1230_v34 = vld [vmem:[#allocation2 + $0xa4] ss:$8 sps:$4 sm:$0xff]   ;;  %v1263_v36 = vld [vmem:[#allocation4 + $0x54] ss:$8 sps:$4 sm:$0xff]   ;;  %v1232_v37 = vld [vmem:[#allocation2 + $0xa0] ss:$8 sps:$4 sm:$0xff]  }
  0x50   : > { %678 = vmatprep.subr.bf16.mxu0 %v1209_v11  ;;  %926 = vmatpush1.bf16.msra.mxu1 %v1253_v23  ;;  %v1233_v38 = vld [vmem:[#allocation2 + $0xb4] ss:$8 sps:$4 sm:$0xff]   ;;  %v1265_v39 = vld [vmem:[#allocation4 + $0x50] ss:$8 sps:$4 sm:$0xff]   ;;  %v1266_v40 = vld [vmem:[#allocation4 + $0x64] ss:$8 sps:$4 sm:$0xff]  }
  0x51   : > { %927 = vmatprep.subr.bf16.mxu1 %v1254_v24  ;;  %v1235_v41 = vld [vmem:[#allocation2 + $0xb0] ss:$8 sps:$4 sm:$0xff]   ;;  %v1236_v42 = vld [vmem:[#allocation2 + $0xc4] ss:$8 sps:$4 sm:$0xff]   ;;  %v1268_v43 = vld [vmem:[#allocation4 + $0x60] ss:$8 sps:$4 sm:$0xff]  }
  0x52   : > { %1199 = vset.pattern.permute.xlu0 %v1379_v8  ;;  %v1269_v44 = vld [vmem:[#allocation4 + $0x74] ss:$8 sps:$4 sm:$0xff]   ;;  %v1238_v45 = vld [vmem:[#allocation2 + $0xc0] ss:$8 sps:$4 sm:$0xff]   ;;  %v1271_v47 = vld [vmem:[#allocation4 + $0x70] ss:$8 sps:$4 sm:$0xff]  }
  0x53   : > { %679 = vmatpush1.bf16.msra.mxu0 %v1211_v12  ;;  %v1239_v46 = vld [vmem:[#allocation2 + $0xd4] ss:$8 sps:$4 sm:$0xff]   ;;  %v1272_v48 = vld [vmem:[#allocation4 + $0x84] ss:$8 sps:$4 sm:$0xff]   ;;  %v1241_v49 = vld [vmem:[#allocation2 + $0xd0] ss:$8 sps:$4 sm:$0xff]  }
  0x54   : > { %680 = vmatprep.subr.bf16.mxu0 %v1212_v13  ;;  %928 = vmatpush1.bf16.msra.mxu1 %v1256_v27  ;;  %v1242_v50 = vld [vmem:[#allocation2 + $0xe4] ss:$8 sps:$4 sm:$0xff]   ;;  %v1274_v51 = vld [vmem:[#allocation4 + $0x80] ss:$8 sps:$4 sm:$0xff]   ;;  %v1275_v52 = vld [vmem:[#allocation4 + $0x94] ss:$8 sps:$4 sm:$0xff]  }
  0x55   : > { %929 = vmatprep.subr.bf16.mxu1 %v1257_v28  ;;  %v1244_v53 = vld [vmem:[#allocation2 + $0xe0] ss:$8 sps:$4 sm:$0xff]   ;;  %v1245_v54 = vld [vmem:[#allocation2 + $0xf4] ss:$8 sps:$4 sm:$0xff]   ;;  %v1277_v55 = vld [vmem:[#allocation4 + $0x90] ss:$8 sps:$4 sm:$0xff]  }
  0x56   : > { %v1278_v56 = vld [vmem:[#allocation4 + $0xa4] ss:$8 sps:$4 sm:$0xff]   ;;  %v1247_v57 = vld [vmem:[#allocation2 + $0xf0] ss:$8 sps:$4 sm:$0xff]   ;;  %v1280_v58 = vld [vmem:[#allocation4 + $0xa0] ss:$8 sps:$4 sm:$0xff]  }
  0x57   : > { %681 = vmatpush1.bf16.msra.mxu0 %v1214_v14  ;;  %v1281_v59 = vld [vmem:[#allocation4 + $0xb4] ss:$8 sps:$4 sm:$0xff]   ;;  %v1283_v60 = vld [vmem:[#allocation4 + $0xb0] ss:$8 sps:$4 sm:$0xff]   ;;  %v1284_v61 = vld [vmem:[#allocation4 + $0xc4] ss:$8 sps:$4 sm:$0xff]  }
  0x58   : > { %682 = vmatprep.subr.bf16.mxu0 %v1215_v15  ;;  %930 = vmatpush1.bf16.msra.mxu1 %v1259_v31  ;;  %v1286_v62 = vld [vmem:[#allocation4 + $0xc0] ss:$8 sps:$4 sm:$0xff]   ;;  %v1287_v63 = vld [vmem:[#allocation4 + $0xd4] ss:$8 sps:$4 sm:$0xff]   ;;  %v356_v4 = vsub.s32 4, %v351_v1  ;;  %v1523_v5 = vsub.s32 1, %v351_v1 }
  0x59   : > { %931 = vmatprep.subr.bf16.mxu1 %v1260_v32  ;;  %v380_v6 = vsub.s32 5, %v351_v1  ;;  %v343_v7 = vld [vmem:[%s1562_s1] sm:$0xff]  ;;  %v402_v8 = vsub.s32 2, %v351_v1  ;;  %v406_v9 = vsub.s32 6, %v351_v1  ;;  %v428_v10 = vsub.s32 3, %v351_v1 }
  0x5a   : > { %v432_v11 = vsub.s32 7, %v351_v1  ;;  %v353_v12 = vrot.slane %v343_v7, %v1521_v3  ;;  %v357_v13 = vrot.slane %v343_v7, %v356_v4  ;;  %v377_v14 = vrot.slane %v343_v7, %v1523_v5 }
  0x5b   : > { %683 = vmatpush1.bf16.msra.mxu0 %v1217_v16  ;;  %v381_v15 = vrot.slane %v343_v7, %v380_v6  ;;  %v403_v16 = vrot.slane %v343_v7, %v402_v8  ;;  %vm969_vm0 = vcmask 31744   ;;  %vm974_vm1 = vcmask 7168  }
  0x5c   : > { %684 = vmatprep.subr.bf16.mxu0 %v1218_v17  ;;  %932 = vmatpush1.bf16.msra.mxu1 %v1262_v35  ;;  %v407_v17 = vrot.slane %v343_v7, %v406_v9  ;;  %v433_v21 = vrot.slane %v343_v7, %v432_v11  ;;  %v367_v23 = vrot.slane %v357_v13, %v1521_v3 }
  0x5d   : > { %933 = vmatprep.subr.bf16.mxu1 %v1263_v36  ;;  %v387_v24 = vrot.slane %v377_v14, %v1523_v5 }
  0x5e   : > { %v417_v27 = vrot.slane %v407_v17, %v402_v8 }
  0x5f   : > { %685 = vmatpush1.bf16.msra.mxu0 %v1220_v20  ;;  %v429_v20 = vrot.slane %v343_v7, %v428_v10 }
  0x60   : > { %686 = vmatprep.subr.bf16.mxu0 %v1221_v22  ;;  %934 = vmatpush1.bf16.msra.mxu1 %v1265_v39  ;;  %v363_v22 = vrot.slane %v353_v12, %v1521_v3 }
  0x61   : > { %935 = vmatprep.subr.bf16.mxu1 %v1266_v40  ;;  %v439_v28 = vrot.slane %v429_v20, %v428_v10 }
  0x63   : > { %687 = vmatpush1.bf16.msra.mxu0 %v1223_v25  ;;  %v391_v25 = vrot.slane %v381_v15, %v1523_v5 }
  0x64   : > { %688 = vmatprep.subr.bf16.mxu0 %v1224_v26  ;;  %936 = vmatpush1.bf16.msra.mxu1 %v1268_v43  ;;  %v413_v26 = vrot.slane %v403_v16, %v402_v8  ;;  %v751_v16 = vld [vmem:[%s1567_s6] sm:$0x3] }
  0x65   : > { %937 = vmatprep.subr.bf16.mxu1 %v1269_v44  ;;  %v756_v17 = vrot.slane %v751_v16, %v1521_v3 }
  0x67   : > { %689 = vmatpush1.bf16.msra.mxu0 %v1226_v29  ;;  %v443_v29 = vrot.slane %v433_v21, %v428_v10 }
  0x68   : > { %690 = vmatprep.subr.bf16.mxu0 %v1227_v30  ;;  %938 = vmatpush1.bf16.msra.mxu1 %v1271_v47 }
  0x69   : > { %939 = vmatprep.subr.bf16.mxu1 %v1272_v48 }
  0x6b   : > { %691 = vmatpush1.bf16.msra.mxu0 %v1229_v33 }
  0x6c   : > { %692 = vmatprep.subr.bf16.mxu0 %v1230_v34  ;;  %940 = vmatpush1.bf16.msra.mxu1 %v1274_v51 }
  0x6d   : > { %941 = vmatprep.subr.bf16.mxu1 %v1275_v52 }
  0x6f   : > { %693 = vmatpush1.bf16.msra.mxu0 %v1232_v37 }
  0x70   : > { %694 = vmatprep.subr.bf16.mxu0 %v1233_v38  ;;  %942 = vmatpush1.bf16.msra.mxu1 %v1277_v55  ;;  %v448_v38 = vld [vmem:[%s1563_s2] sm:$0x3] }
  0x71   : > { %943 = vmatprep.subr.bf16.mxu1 %v1278_v56 }
  0x73   : > { %695 = vmatpush1.bf16.msra.mxu0 %v1235_v41 }
  0x74   : > { %696 = vmatprep.subr.bf16.mxu0 %v1236_v42  ;;  %944 = vmatpush1.bf16.msra.mxu1 %v1280_v58  ;;  %v1290_v58 = vld [vmem:[#allocation4 + $0xe4] ss:$8 sps:$4 sm:$0xff]  }
  0x75   : > { %945 = vmatprep.subr.bf16.mxu1 %v1281_v59  ;;  %v1292_v59 = vld [vmem:[#allocation4 + $0xe0] ss:$8 sps:$4 sm:$0xff]  }
  0x77   : > { %697 = vmatpush1.bf16.msra.mxu0 %v1238_v45  ;;  %v453_v45 = vrot.slane %v448_v38, %v1521_v3 }
  0x78   : > { %698 = vmatprep.subr.bf16.mxu0 %v1239_v46  ;;  %946 = vmatpush1.bf16.msra.mxu1 %v1283_v60  ;;  %v457_v46 = vrot.slane %v448_v38, %v1523_v5  ;;  %v1293_v60 = vld [vmem:[#allocation4 + $0xf4] ss:$8 sps:$4 sm:$0xff]  }
  0x79   : > { %947 = vmatprep.subr.bf16.mxu1 %v1284_v61  ;;  %v1295_v61 = vld [vmem:[#allocation4 + $0xf0] ss:$8 sps:$4 sm:$0xff]  }
  0x7b   : > { %699 = vmatpush1.bf16.msra.mxu0 %v1241_v49 }
  0x7c   : > { %700 = vmatprep.subr.bf16.mxu0 %v1242_v50  ;;  %948 = vmatpush1.bf16.msra.mxu1 %v1286_v62  ;;  %v500_v62 = vld [vmem:[%s1565_s4] sm:$0x3] }
  0x7d   : > { %949 = vmatprep.subr.bf16.mxu1 %v1287_v63  ;;  %v505_v63 = vrot.slane %v500_v62, %v1521_v3  ;;  %v509_v0 = vrot.slane %v500_v62, %v1523_v5 }
  0x7f   : > { %701 = vmatpush1.bf16.msra.mxu0 %v1244_v53 }
  0x80   : > { %702 = vmatprep.subr.bf16.mxu0 %v1245_v54 }
  0x83   : > { %703 = vmatpush1.bf16.msra.mxu0 %v1247_v57  ;;  %v1289_v57 = vld [vmem:[#allocation4 + $0xd0] ss:$8 sps:$4 sm:$0xff]  }
  0x84   : > { %950 = vmatpush1.bf16.msra.mxu1 %v1289_v57 }
  0x85   : > { %951 = vmatprep.subr.bf16.mxu1 %v1290_v58 }
  0x88   : > { %952 = vmatpush1.bf16.msra.mxu1 %v1292_v59 }
  0x89   : > { %953 = vmatprep.subr.bf16.mxu1 %v1293_v60 }
  0x8c   : > { %954 = vmatpush1.bf16.msra.mxu1 %v1295_v61 }
  0xc8   : > { %v347_v18 = vpop.permute.xlu0 %346  ;;  %v398_v19 = vpop.permute.xlu1 %397 }
  0xc9   : > { %v368_v32 = vmul.f32 %v363_v22, %v347_v18  ;;  %v369_v33 = vmul.f32 %v367_v23, %v347_v18  ;;  %v418_v36 = vmul.f32 %v413_v26, %v398_v19  ;;  %v419_v37 = vmul.f32 %v417_v27, %v398_v19 }
  0xca   : > { %v760_v26 = vrot.slane %v751_v16, %v1523_v5 }
  0xcd   : > { %v372_v30 = vpop.permute.xlu0 %371  ;;  %v424_v31 = vpop.permute.xlu1 %423 }
  0xce   : > { %v392_v34 = vmul.f32 %v387_v24, %v372_v30  ;;  %v393_v35 = vmul.f32 %v391_v25, %v372_v30  ;;  %v444_v41 = vmul.f32 %v439_v28, %v424_v31  ;;  %v445_v42 = vmul.f32 %v443_v29, %v424_v31 }
  0xd0   : > { %v394_v39 = vadd.f32 %v392_v34, %v368_v32  ;;  %v395_v40 = vadd.f32 %v393_v35, %v369_v33 }
  0xd2   : > { %v420_v43 = vadd.f32 %v418_v36, %v394_v39  ;;  %v421_v44 = vadd.f32 %v419_v37, %v395_v40 }
  0xd4   : > { %v446_v47 = vadd.f32 %v444_v41, %v420_v43  ;;  %v447_v48 = vadd.f32 %v445_v42, %v421_v44 }
  0xd6   : > { %v461_v49 = vadd.f32 %v457_v46, %v447_v48  ;;  %v460_v50 = vadd.f32 %v453_v45, %v446_v47 }
  0xd8   : > { %v463_v51 = vmul.f32 0.01, %v461_v49  ;;  %v462_v52 = vmul.f32 0.01, %v460_v50 }
  0xda   : > { %v465_v53 = vmax.f32 %v461_v49, %v463_v51  ;;  %v464_v54 = vmax.f32 %v460_v50, %v462_v52 }
  0xdc   : > { %v467_v55 = vpack.c.bf16 %v465_v53, %v465_v53  ;;  %v466_v56 = vpack.c.bf16 %v464_v54, %v464_v54 }
  0xde   : > { %704 = vmatprep.mubr.bf16.mxu0 %v467_v55 }
  0xdf   : > { %705 = vmatmul.mubr.bf16.vlgmr.msra.gmra.mrb[0].mxu0 %v466_v56 }
 0x1b2   : > { %v706_v1 = vpop.f32.mrb[0].mxu0 }
 0x1b3   : > { %v707_v4 = vadd.f32 %v706_v1, %v505_v63  ;;  %v708_v6 = vpop.f32.mrb[1].mxu0 }
 0x1b4   : > { %v709_v7 = vadd.f32 %v708_v6, %v509_v0  ;;  %v710_v8 = vpop.f32.mrb[2].mxu0 }
 0x1b5   : > { %v713_v9 = vmul.f32 0.01, %v707_v4  ;;  %v711_v10 = vpop.f32.mrb[3].mxu0 }
 0x1b6   : > { %v714_v11 = vmul.f32 0.01, %v709_v7 }
 0x1b7   : > { %v715_v12 = vmax.f32 %v707_v4, %v713_v9 }
 0x1b8   : > { %v716_v13 = vmax.f32 %v709_v7, %v714_v11 }
 0x1b9   : > { %v717_v15 = vpack.c.bf16 %v715_v12, %v715_v12 }
 0x1ba   : > { %v718_v14 = vpack.c.bf16 %v716_v13, %v716_v13 }
 0x1bc   : > { %955 = vmatprep.mubr.bf16.mxu1 %v718_v14 }
 0x1bd   : > { %956 = vmatmul.mubr.bf16.vlgmr.msra.gmra.mrb[0].mxu1 %v717_v15 }
 0x290   : > { %v957_v18 = vpop.f32.mrb[0].mxu1 }
 0x291   : > { %v958_v19 = vadd.f32 %v957_v18, %v756_v17  ;;  %v959_v20 = vpop.f32.mrb[1].mxu1 }
 0x292   : > { %v961_v21 = vpop.f32.mrb[2].mxu1  ;;  %v960_v28 = vadd.f32 %v959_v20, %v760_v26 }
 0x293   : > { %1296 = vtanh.f32 %v958_v19  ;;  %v962_v22 = vpop.f32.mrb[3].mxu1 }
 0x29d   : > { %v1297_v23 = vpop.eup %1296 }
 0x29e   : > { %v965_v24 = vmul.f32 1.442695, %v1297_v23  ;;  %v971_v25 = vsel %vm969_vm0, %v1297_v23, 0.0 }
 0x29f   : > { %972 = vadd.xlane.f32.xlu1 %v971_v25 }
 0x2a0   : > { %1298 = vpow2.f32 %v965_v24 }
 0x2aa   : > { %v1299_v27 = vpop.eup %1298 }
 0x2ab   : > { %v967_v3 = vmul.f32 %v1299_v27, %v1515_v2 }
 0x2ad   : > { %v968_v29 = vadd.f32 %v967_v3, %v960_v28 }
 0x2af   : > { %970 = vst.msk [vmem:[%s337_s10] sm:$0xff] %vm969_vm0, %v968_v29 }
 0x32c   : > { %v973_v30 = vpop.xlane.xlu1 %972 }
 0x32d   : > { %975 = vst.msk [vmem:[%s341_s15] sm:$0xff] %vm974_vm1, %v973_v30 }
 0x32e PF: > { %s21_s27 = sadd.s32 1, %s1370_s27  }
 0x32f   : > { %p18_p5 = scmp.ge.s32.totalorder %s21_s27, 5  }
 0x331   :  { %20 = sbr.rel (!%p18_p5) target bundleno = 2 (0x2), region = 99 }
 0x338   :  { %1009 = vsyncpa [#allocation3], 1 }
 0x339   :  { %1011 = vsyncpa [#allocation3 + $0x1], 1 }
 0x33a   :  { %1012 = vsyncpa [#allocation5], 1 }

</bundles_post_ra>
